<compile_context>
chip_gen: v5e
topology: v5e:2x2
jax: 0.10.0
libtpu: 0.0.40
codegen_flags: <defaults>
</compile_context>

<pallas_src>
import functools
from math import sqrt

import jax
import jax.numpy as jnp
from jax import lax
from jax.experimental import pallas as pl
from jax.experimental.pallas import tpu as pltpu

_NEG_INF = -1e30  # large negative instead of -inf: keeps all arithmetic finite


def _round_up(x, m):
    return ((x + m - 1) // m) * m


def _flash_self_attn_kernel(xq_ref, xkv_ref, w_ref, o_ref,
                            q_scr, m_scr, l_scr, acc_scr,
                            *, scale, d_pad, kv_len, block_kv, need_mask):
    """One (batch, q-tile, kv-tile) grid step of online-softmax attention.

    xq_ref : (TQ, D_in)       query-side rows of x
    xkv_ref: (TKV, D_in)      key/value-side rows of x
    w_ref  : (D_in, 3*D_pad)  packed [Wq | Wk | Wv] (zero-padded to lane width)
    o_ref  : (TQ, D_pad)      output tile (written on the last kv step)
    """
    kj = pl.program_id(2)

    @pl.when(kj == 0)
    def _init():
        # Project the query tile once per (batch, q-tile); reused for all kv steps.
        q_scr[...] = jnp.dot(xq_ref[...], w_ref[:, :d_pad],
                             preferred_element_type=jnp.float32)
        m_scr[...] = jnp.full(m_scr.shape, _NEG_INF, dtype=jnp.float32)
        l_scr[...] = jnp.zeros(l_scr.shape, dtype=jnp.float32)
        acc_scr[...] = jnp.zeros(acc_scr.shape, dtype=jnp.float32)

    x_kv = xkv_ref[...]
    # Fused K/V projection: single matmul against the (D_in, 2*D_pad) slab.
    kv = jnp.dot(x_kv, w_ref[:, d_pad:], preferred_element_type=jnp.float32)
    k = kv[:, :d_pad].astype(x_kv.dtype)   # slice at 128-lane boundary: cheap
    v = kv[:, d_pad:].astype(x_kv.dtype)

    q = q_scr[...].astype(x_kv.dtype)
    # s = q @ k^T without materializing a transpose: contract the feature axis.
    s = lax.dot_general(q, k, (((1,), (1,)), ((), ())),
                        preferred_element_type=jnp.float32) * scale

    if need_mask:  # static (trace-time) decision: only emitted when N is padded
        kv_pos = kj * block_kv + lax.broadcasted_iota(jnp.int32, s.shape, 1)
        s = jnp.where(kv_pos < kv_len, s, _NEG_INF)

    # Online softmax update.
    m_prev = m_scr[...]
    m_new = jnp.maximum(m_prev, jnp.max(s, axis=-1, keepdims=True))
    alpha = jnp.exp(m_prev - m_new)
    p = jnp.exp(s - m_new)
    l_scr[...] = alpha * l_scr[...] + jnp.sum(p, axis=-1, keepdims=True)
    acc_scr[...] = alpha * acc_scr[...] + jnp.dot(
        p.astype(v.dtype), v, preferred_element_type=jnp.float32)
    m_scr[...] = m_new

    @pl.when(kj == pl.num_programs(2) - 1)
    def _finalize():
        # Normalization deferred to the last kv step (once per q tile).
        o_ref[...] = (acc_scr[...] *
                      pl.reciprocal(l_scr[...], approx=False)).astype(o_ref.dtype)


def self_attention(x, wq, wk, wv, *, block=128, interpret=False):
    """x: (B, N, D_in); wq/wk/wv: (D_in, D_out). Returns (B, N, D_out)."""
    B, N, D_in = x.shape
    D_out = wq.shape[1]
    scale = 1.0 / sqrt(D_out)

    # Lane-dense padding of the feature dim (multiple of 128) and row padding of
    # the sequence so the (shared) q / kv tile size divides it evenly.
    d_pad = _round_up(D_out, 128)
    blk = min(block, _round_up(N, 8))
    n_pad = _round_up(N, blk)

    x_p = x if n_pad == N else jnp.pad(x, ((0, 0), (0, n_pad - N), (0, 0)))

    def _pad_w(w):
        w = w if d_pad == D_out else jnp.pad(w, ((0, 0), (0, d_pad - D_out)))
        return w.astype(x.dtype)

    # Packed [Wq | Wk | Wv]: one weight slab, one DMA / double-buffer.
    w_qkv = jnp.concatenate([_pad_w(wq), _pad_w(wk), _pad_w(wv)], axis=1)

    n_q = n_pad // blk
    n_kv = n_pad // blk

    kernel = functools.partial(
        _flash_self_attn_kernel,
        scale=scale, d_pad=d_pad, kv_len=N, block_kv=blk,
        need_mask=(n_pad != N))

    # Scoped-VMEM budget: double-buffered x/o tiles + weight slab + f32 scratch.
    elt = jnp.dtype(x.dtype).itemsize
    vmem_need = (2 * 2 * blk * D_in * elt          # xq + xkv tiles, double-buffered
                 + 2 * D_in * 3 * d_pad * elt      # fused weights, double-buffered
                 + 2 * blk * d_pad * elt           # output tile, double-buffered
                 + 4 * (2 * blk * d_pad + 2 * blk))  # q/acc/m/l scratch (f32)
    vmem_limit = int(min(max(2 * vmem_need, 32 << 20), 48 << 20))

    out = pl.pallas_call(
        kernel,
        out_shape=jax.ShapeDtypeStruct((B, n_pad, d_pad), x.dtype),
        grid_spec=pltpu.PrefetchScalarGridSpec(
            num_scalar_prefetch=0,
            grid=(B, n_q, n_kv),
            in_specs=[
                # query-side rows of x (batch dim squeezed out of the block)
                pl.BlockSpec((None, blk, D_in), lambda b, qi, kj: (b, qi, 0)),
                # key/value-side rows of x
                pl.BlockSpec((None, blk, D_in), lambda b, qi, kj: (b, kj, 0)),
                # packed weights, resident across the whole grid
                pl.BlockSpec((D_in, 3 * d_pad), lambda b, qi, kj: (0, 0)),
            ],
            out_specs=pl.BlockSpec((None, blk, d_pad),
                                   lambda b, qi, kj: (b, qi, 0)),
            scratch_shapes=[
                pltpu.VMEM((blk, d_pad), jnp.float32),   # cached Q tile
                pltpu.VMEM((blk, 1), jnp.float32),       # running max
                pltpu.VMEM((blk, 1), jnp.float32),       # running sum
                pltpu.VMEM((blk, d_pad), jnp.float32),   # output accumulator
            ]),
        compiler_params=pltpu.CompilerParams(
            dimension_semantics=("parallel", "parallel", "arbitrary"),
            vmem_limit_bytes=vmem_limit,
        ),
        interpret=interpret,
    )(x_p, x_p, w_qkv)

    return out[:, :N, :D_out]


def self_attention_ref(x, wq, wk, wv):
    """Pure-JAX reference matching the PyTorch forward exactly."""
    dim_out = wq.shape[1]
    scale = 1.0 / sqrt(dim_out)
    q = jnp.einsum("bnd,de->bne", x, wq)
    k = jnp.einsum("bnd,de->bne", x, wk)
    v = jnp.einsum("bnd,de->bne", x, wv)
    dist = jnp.einsum("bne,bme->bnm", q, k) * scale
    dist = jax.nn.softmax(dist, axis=-1)
    return jnp.einsum("bnm,bme->bne", dist, v)


if __name__ == "__main__":
    key = jax.random.PRNGKey(0)
    keys = jax.random.split(key, 8)

    # ---- small shape matching forward(x: (batch, n, dim_in)) ----
    batch, n, dim_in, dim_out = 2, 8, 32, 32
    bound = 1.0 / sqrt(dim_in)
    x = jax.random.normal(keys[0], (batch, n, dim_in), dtype=jnp.float32)
    wq = jax.random.uniform(keys[1], (dim_in, dim_out), jnp.float32, -bound, bound)
    wk = jax.random.uniform(keys[2], (dim_in, dim_out), jnp.float32, -bound, bound)
    wv = jax.random.uniform(keys[3], (dim_in, dim_out), jnp.float32, -bound, bound)

    out = jax.block_until_ready(self_attention(x, wq, wk, wv))
    ref = jax.block_until_ready(self_attention_ref(x, wq, wk, wv))
    assert out.shape == (batch, n, dim_out)
    assert jnp.allclose(out, ref, atol=1e-4, rtol=1e-4)

    # ---- second case: exercises multi-tile flash path + seq/feature padding ----
    b2, n2, di2, do2 = 2, 200, 64, 48
    bnd2 = 1.0 / sqrt(di2)
    x2 = jax.random.normal(keys[4], (b2, n2, di2), dtype=jnp.float32)
    wq2 = jax.random.uniform(keys[5], (di2, do2), jnp.float32, -bnd2, bnd2)
    wk2 = jax.random.uniform(keys[6], (di2, do2), jnp.float32, -bnd2, bnd2)
    wv2 = jax.random.uniform(keys[7], (di2, do2), jnp.float32, -bnd2, bnd2)

    out2 = jax.block_until_ready(self_attention(x2, wq2, wk2, wv2, block=128))
    ref2 = jax.block_until_ready(self_attention_ref(x2, wq2, wk2, wv2))
    assert out2.shape == (b2, n2, do2)
    assert jnp.allclose(out2, ref2, atol=1e-4, rtol=1e-4)

    print("KERNEL_OK")
</pallas_src>

<mosaic_0001>
module attributes {stable_mosaic.version = 11 : i64} {
  func.func @_flash_self_attn_kernel(%arg0: i32, %arg1: i32, %arg2: i32, %arg3: memref<1x8x32xf32, #tpu.memory_space<vmem>>, %arg4: memref<1x8x32xf32, #tpu.memory_space<vmem>>, %arg5: memref<32x384xf32, #tpu.memory_space<vmem>>, %arg6: memref<1x8x128xf32, #tpu.memory_space<vmem>>, %arg7: memref<8x128xf32, #tpu.memory_space<vmem>>, %arg8: memref<8x1xf32, #tpu.memory_space<vmem>>, %arg9: memref<8x1xf32, #tpu.memory_space<vmem>>, %arg10: memref<8x128xf32, #tpu.memory_space<vmem>>) attributes {dimension_semantics = [#tpu.dimension_semantics<parallel>, #tpu.dimension_semantics<parallel>, #tpu.dimension_semantics<arbitrary>], iteration_bounds = array<i64: 2, 1, 1>, scalar_prefetch = 0 : i64, scratch_operands = 4 : i64, tpu.core_type = #tpu.core_type<tc>, window_params = [{transform_indices = @transform_0, window_bounds = array<i64: 1, 8, 32>}, {transform_indices = @transform_1, window_bounds = array<i64: 1, 8, 32>}, {pipeline_mode = #tpu.pipeline_mode<synchronous>, transform_indices = @transform_2, window_bounds = array<i64: 32, 384>}, {transform_indices = @transform_3, window_bounds = array<i64: 1, 8, 128>}]} {
    %c0_i32 = arith.constant 0 : i32
    %0 = arith.cmpi eq, %arg2, %c0_i32 : i32
    %1 = arith.extui %0 : i1 to i32
    %c0_i32_0 = arith.constant 0 : i32
    %2 = arith.cmpi ne, %1, %c0_i32_0 : i32
    scf.if %2 {
      %c0_25 = arith.constant 0 : index
      %c0_26 = arith.constant 0 : index
      %c0_27 = arith.constant 0 : index
      %38 = vector.load %arg3[%c0_25, %c0_26, %c0_27] : memref<1x8x32xf32, #tpu.memory_space<vmem>>, vector<1x8x32xf32>
      %39 = vector.shape_cast %38 : vector<1x8x32xf32> to vector<8x32xf32>
      %c0_28 = arith.constant 0 : index
      %c0_29 = arith.constant 0 : index
      %40 = vector.load %arg5[%c0_28, %c0_29] : memref<32x384xf32, #tpu.memory_space<vmem>>, vector<32x128xf32>
      %cst_30 = arith.constant dense<0.000000e+00> : vector<8x128xf32>
      %41 = tpu.matmul %39, %40, %cst_30 {dimension_numbers = #tpu.dot_dimension_numbers<[1], [0], [0], [1], [0, 0, 1, 1], [], []>} : vector<8x32xf32>, vector<32x128xf32>, vector<8x128xf32> -> vector<8x128xf32>
      %c0_31 = arith.constant 0 : index
      %c0_32 = arith.constant 0 : index
      %42 = vector.load %arg7[%c0_31, %c0_32] : memref<8x128xf32, #tpu.memory_space<vmem>>, vector<8x128xf32>
      tpu.vector_store %arg7[%c0_31, %c0_32], %41 {strides = array<i32>} : memref<8x128xf32, #tpu.memory_space<vmem>>, vector<8x128xf32>,
      %cst_33 = arith.constant -1.000000e+30 : f32
      %43 = vector.broadcast %cst_33 : f32 to vector<8x1xf32>
      %c0_34 = arith.constant 0 : index
      %c0_35 = arith.constant 0 : index
      %44 = vector.load %arg8[%c0_34, %c0_35] : memref<8x1xf32, #tpu.memory_space<vmem>>, vector<8x1xf32>
      tpu.vector_store %arg8[%c0_34, %c0_35], %43 {strides = array<i32>} : memref<8x1xf32, #tpu.memory_space<vmem>>, vector<8x1xf32>,
      %cst_36 = arith.constant 0.000000e+00 : f32
      %45 = vector.broadcast %cst_36 : f32 to vector<8x1xf32>
      %c0_37 = arith.constant 0 : index
      %c0_38 = arith.constant 0 : index
      %46 = vector.load %arg9[%c0_37, %c0_38] : memref<8x1xf32, #tpu.memory_space<vmem>>, vector<8x1xf32>
      tpu.vector_store %arg9[%c0_37, %c0_38], %45 {strides = array<i32>} : memref<8x1xf32, #tpu.memory_space<vmem>>, vector<8x1xf32>,
      %cst_39 = arith.constant 0.000000e+00 : f32
      %47 = vector.broadcast %cst_39 : f32 to vector<8x128xf32>
      %c0_40 = arith.constant 0 : index
      %c0_41 = arith.constant 0 : index
      %48 = vector.load %arg10[%c0_40, %c0_41] : memref<8x128xf32, #tpu.memory_space<vmem>>, vector<8x128xf32>
      tpu.vector_store %arg10[%c0_40, %c0_41], %47 {strides = array<i32>} : memref<8x128xf32, #tpu.memory_space<vmem>>, vector<8x128xf32>,
    } else {
    }
    %c0 = arith.constant 0 : index
    %c0_1 = arith.constant 0 : index
    %c0_2 = arith.constant 0 : index
    %3 = vector.load %arg4[%c0, %c0_1, %c0_2] : memref<1x8x32xf32, #tpu.memory_space<vmem>>, vector<1x8x32xf32>
    %4 = vector.shape_cast %3 : vector<1x8x32xf32> to vector<8x32xf32>
    %c0_3 = arith.constant 0 : index
    %c128 = arith.constant 128 : index
    %5 = vector.load %arg5[%c0_3, %c128] : memref<32x384xf32, #tpu.memory_space<vmem>>, vector<32x256xf32>
    %cst = arith.constant dense<0.000000e+00> : vector<8x256xf32>
    %6 = tpu.matmul %4, %5, %cst {dimension_numbers = #tpu.dot_dimension_numbers<[1], [0], [0], [1], [0, 0, 1, 1], [], []>} : vector<8x32xf32>, vector<32x256xf32>, vector<8x256xf32> -> vector<8x256xf32>
    %7 = vector.extract_strided_slice %6 {offsets = [0, 0], sizes = [8, 128], strides = [1, 1]} : vector<8x256xf32> to vector<8x128xf32>
    %8 = vector.extract_strided_slice %6 {offsets = [0, 128], sizes = [8, 128], strides = [1, 1]} : vector<8x256xf32> to vector<8x128xf32>
    %c0_4 = arith.constant 0 : index
    %c0_5 = arith.constant 0 : index
    %9 = vector.load %arg7[%c0_4, %c0_5] : memref<8x128xf32, #tpu.memory_space<vmem>>, vector<8x128xf32>
    %cst_6 = arith.constant dense<0.000000e+00> : vector<8x8xf32>
    %10 = tpu.matmul %9, %7, %cst_6 {dimension_numbers = #tpu.dot_dimension_numbers<[1], [1], [0], [0], [0, 0, 1, 0], [], []>} : vector<8x128xf32>, vector<8x128xf32>, vector<8x8xf32> -> vector<8x8xf32>
    %cst_7 = arith.constant 0.176776692 : f32
    %11 = vector.broadcast %cst_7 : f32 to vector<8x8xf32>
    %12 = arith.mulf %10, %11 : vector<8x8xf32>
    %c0_8 = arith.constant 0 : index
    %c0_9 = arith.constant 0 : index
    %13 = vector.load %arg8[%c0_8, %c0_9] : memref<8x1xf32, #tpu.memory_space<vmem>>, vector<8x1xf32>
    %cst_10 = arith.constant dense<0xFF800000> : vector<8xf32>
    %14 = vector.multi_reduction <maximumf>, %12, %cst_10 [1] : vector<8x8xf32> to vector<8xf32>
    %15 = vector.shape_cast %14 : vector<8xf32> to vector<8x1xf32>
    %16 = arith.maximumf %13, %15 : vector<8x1xf32>
    %17 = arith.subf %13, %16 : vector<8x1xf32>
    %18 = math.exp %17 : vector<8x1xf32>
    %19 = vector.broadcast %16 : vector<8x1xf32> to vector<8x8xf32>
    %20 = arith.subf %12, %19 : vector<8x8xf32>
    %21 = math.exp %20 : vector<8x8xf32>
    %c0_11 = arith.constant 0 : index
    %c0_12 = arith.constant 0 : index
    %22 = vector.load %arg9[%c0_11, %c0_12] : memref<8x1xf32, #tpu.memory_space<vmem>>, vector<8x1xf32>
    %23 = arith.mulf %18, %22 : vector<8x1xf32>
    %cst_13 = arith.constant dense<0.000000e+00> : vector<8xf32>
    %24 = vector.multi_reduction <add>, %21, %cst_13 [1] : vector<8x8xf32> to vector<8xf32>
    %25 = vector.shape_cast %24 : vector<8xf32> to vector<8x1xf32>
    %26 = arith.addf %23, %25 : vector<8x1xf32>
    %c0_14 = arith.constant 0 : index
    %c0_15 = arith.constant 0 : index
    %27 = vector.load %arg9[%c0_14, %c0_15] : memref<8x1xf32, #tpu.memory_space<vmem>>, vector<8x1xf32>
    tpu.vector_store %arg9[%c0_14, %c0_15], %26 {strides = array<i32>} : memref<8x1xf32, #tpu.memory_space<vmem>>, vector<8x1xf32>,
    %c0_16 = arith.constant 0 : index
    %c0_17 = arith.constant 0 : index
    %28 = vector.load %arg10[%c0_16, %c0_17] : memref<8x128xf32, #tpu.memory_space<vmem>>, vector<8x128xf32>
    %29 = vector.broadcast %18 : vector<8x1xf32> to vector<8x128xf32>
    %30 = arith.mulf %29, %28 : vector<8x128xf32>
    %cst_18 = arith.constant dense<0.000000e+00> : vector<8x128xf32>
    %31 = tpu.matmul %21, %8, %cst_18 {dimension_numbers = #tpu.dot_dimension_numbers<[1], [0], [0], [1], [0, 0, 1, 1], [], []>} : vector<8x8xf32>, vector<8x128xf32>, vector<8x128xf32> -> vector<8x128xf32>
    %32 = arith.addf %30, %31 : vector<8x128xf32>
    %c0_19 = arith.constant 0 : index
    %c0_20 = arith.constant 0 : index
    %33 = vector.load %arg10[%c0_19, %c0_20] : memref<8x128xf32, #tpu.memory_space<vmem>>, vector<8x128xf32>
    tpu.vector_store %arg10[%c0_19, %c0_20], %32 {strides = array<i32>} : memref<8x128xf32, #tpu.memory_space<vmem>>, vector<8x128xf32>,
    %c0_21 = arith.constant 0 : index
    %c0_22 = arith.constant 0 : index
    %34 = vector.load %arg8[%c0_21, %c0_22] : memref<8x1xf32, #tpu.memory_space<vmem>>, vector<8x1xf32>
    tpu.vector_store %arg8[%c0_21, %c0_22], %16 {strides = array<i32>} : memref<8x1xf32, #tpu.memory_space<vmem>>, vector<8x1xf32>,
    %c0_i32_23 = arith.constant 0 : i32
    %35 = arith.cmpi eq, %arg2, %c0_i32_23 : i32
    %36 = arith.extui %35 : i1 to i32
    %c0_i32_24 = arith.constant 0 : i32
    %37 = arith.cmpi ne, %36, %c0_i32_24 : i32
    scf.if %37 {
      %c0_25 = arith.constant 0 : index
      %c0_26 = arith.constant 0 : index
      %38 = vector.load %arg10[%c0_25, %c0_26] : memref<8x128xf32, #tpu.memory_space<vmem>>, vector<8x128xf32>
      %c0_27 = arith.constant 0 : index
      %c0_28 = arith.constant 0 : index
      %39 = vector.load %arg9[%c0_27, %c0_28] : memref<8x1xf32, #tpu.memory_space<vmem>>, vector<8x1xf32>
      %40 = tpu.reciprocal %39 : vector<8x1xf32> -> vector<8x1xf32>
      %41 = vector.broadcast %40 : vector<8x1xf32> to vector<8x128xf32>
      %42 = arith.mulf %38, %41 : vector<8x128xf32>
      %c0_29 = arith.constant 0 : index
      %c0_30 = arith.constant 0 : index
      %c0_31 = arith.constant 0 : index
      %43 = vector.load %arg6[%c0_29, %c0_30, %c0_31] : memref<1x8x128xf32, #tpu.memory_space<vmem>>, vector<1x8x128xf32>
      %44 = vector.shape_cast %43 : vector<1x8x128xf32> to vector<8x128xf32>
      %45 = vector.shape_cast %42 : vector<8x128xf32> to vector<1x8x128xf32>
      tpu.vector_store %arg6[%c0_29, %c0_30, %c0_31], %45 {strides = array<i32>} : memref<1x8x128xf32, #tpu.memory_space<vmem>>, vector<1x8x128xf32>,
    } else {
    }
    return
  }
  func.func @transform_0(%arg0: i32, %arg1: i32, %arg2: i32) -> (i32, i32, i32) {
    %c0_i32 = arith.constant 0 : i32
    %c0_i32_0 = arith.constant 0 : i32
    return %arg0, %arg1, %c0_i32 : i32, i32, i32
  }
  func.func @transform_1(%arg0: i32, %arg1: i32, %arg2: i32) -> (i32, i32, i32) {
    %c0_i32 = arith.constant 0 : i32
    %c0_i32_0 = arith.constant 0 : i32
    return %arg0, %arg2, %c0_i32 : i32, i32, i32
  }
  func.func @transform_2(%arg0: i32, %arg1: i32, %arg2: i32) -> (i32, i32) {
    %c0_i32 = arith.constant 0 : i32
    %c0_i32_0 = arith.constant 0 : i32
    %c0_i32_1 = arith.constant 0 : i32
    return %c0_i32, %c0_i32_0 : i32, i32
  }
  func.func @transform_3(%arg0: i32, %arg1: i32, %arg2: i32) -> (i32, i32, i32) {
    %c0_i32 = arith.constant 0 : i32
    %c0_i32_0 = arith.constant 0 : i32
    return %arg0, %arg1, %c0_i32 : i32, i32, i32
  }
}

</mosaic_0001>

<bundles_post_ra>
// kernel: tpu_custom_call.1
= control target key start
LH: loop header
LB: loop body
LE: loop exit
PB: predicated region body
PF: predicated region fallthrough
CT: control target
= control target key end

     0   :  { %s1089_s0 = inlined_call_operand.hbm [shape: f32[2,8,32], index: 0, kind: input, shape index: {}]   ;;  %s1090_s1 = inlined_call_operand.hbm [shape: f32[2,8,32], index: 1, kind: input, shape index: {}]   ;;  %s1091_s2 = inlined_call_operand.hbm [shape: f32[32,384], index: 2, kind: input, shape index: {}]   ;;  %s1092_s3 = inlined_call_operand.hbm [shape: f32[2,8,128], index: 3, kind: output, shape index: {}]  }
   0x1   :  { %1095 = sst [smem:[#allocation20_spill]] %s1091_s2 }
   0x2   :  { %8 = vsyncpa [#allocation7], 0 }
   0x3   :  { %10 = vsyncpa [#allocation7 + $0x1], 0 }
   0x4   :  { %11 = vsyncpa [#allocation10], 0 }
   0x5   :  { %13 = vsyncpa [#allocation10 + $0x1], 0 }
   0x6   :  { %14 = vsyncpa [#allocation8], 0 }
   0x7   :  { %16 = vsyncpa [#allocation8 + $0x1], 0  ;;  %s922_s12 = smov 0   ;;  %s924_s13 = smov 0  }
   0x8   :  { %s926_s14 = smov 0   ;;  %s928_s15 = smov 0  }
   0x9   :  { %s930_s16 = smov 0   ;;  %s932_s17 = smov 0  }
   0xa LB: > { %1096 = sst [smem:[#allocation17_spill]] %s890_s16  ;;  %s953_s18 = sadd.s32 4294967295, %s894_s17   ;;  %s894_s17 = sphi %s932_s17, %s22_s17   ;;  %s890_s16 = sphi %s930_s16, %s1107_s16   ;;  %s886_s15 = sphi %s928_s15, %s1106_s15   ;;  %s882_s14 = sphi %s926_s14, %s1110_s14   ;;  %s878_s13 = sphi %s924_s13, %s1109_s13   ;;  %s874_s12 = sphi %s922_s12, %s1108_s12  }
   0xb   : > { %p602_p0 = scmp.ge.s32.totalorder %s894_s17, 1  ;;  %p64_p1 = scmp.eq.s32.totalorder %s953_s18, 0 }
   0xc   : > { %p151_p2 = scmp.lt.s32.totalorder %s894_s17, 3  ;;  %s1097_s2 = sld [smem:[#allocation20_spill]] }
   0xd   : > { %s896_s23 = smov [#allocation11]   ;;  %p604_p6 = scmp.ge.s32.totalorder %s894_s17, 2 }
   0xe   : > { %p961_p3 = pnand %p602_p0, %p151_p2  ;;  %s164_s24 = sshll.u32 %s896_s23, 4  ;;  %s165_s24 = int_to_ptr.vmem [resolvable:$true] %s164_s24 }
   0xf   : > { %s897_s25 = smov 384   ;;  %s898_s26 = smov 24  }
  0x10   : > { %p632_p4 = pneg %p961_p3  ;;  %s601_s27 = sadd.s32 4294967294, %s894_s17  }
  0x11   : > { %s41_s28 = sadd.s32 1, %s890_s16  ;;  %s50_s29 = sadd.s32 1, %s882_s14 }
  0x12   : > { %s162_s21 = sshll.u32 %s1097_s2, 4  ;;  %p633_p5 = pnand %p632_p4, %p64_p1  ;;  %s163_s21 = int_to_ptr.hbm [resolvable:$true] %s162_s21 }
  0x13   : > { %p43_p7 = scmp.ge.s32.totalorder %s41_s28, 2  ;;  %p57_p8 = scmp.ne.s32.totalorder %s882_s14, %s878_s13 }
  0x14   : > { %635 = dma.hbm_to_vmem [thread:$0]  (!%p633_p5), %s163_s21, 1536, %s165_s24, [#allocation10], %s897_s25, %s897_s25, %s898_s26  }
  0x15   : > { %p58_p9 = scmp.eq.s32.totalorder %s894_s17, 0  ;;  %p63_p10 = scmp.ne.s32.totalorder %s878_s13, %s874_s12 }
  0x16   : > { %s1112_s28 = smov (%p43_p7, %s41_s28), 0  ;;  %p138_p13 = scmp.eq.s32.totalorder %s953_s18, 1 }
  0x17   : > { %1099 = sst [smem:[#allocation18_spill]] %s1112_s28  ;;  %p980_p11 = por %p58_p9, %p57_p8 }
  0x18   : > { %p986_p12 = por %p64_p1, %p63_p10  ;;  %s45_s5 = ssub.s32 %s890_s16, %s1112_s28 }
  0x19   : > { %p48_p0 = scmp.eq.s32.totalorder %s45_s5, 0  ;;  %p144_p2 = scmp.eq.s32.totalorder %s601_s27, 1 }
  0x1a   : > { %p993_p4 = por %p138_p13, %p57_p8  ;;  %p648_p5 = scmp.lt.s32.totalorder %s894_s17, 2 }
  0x1b   : > { %s999_s7 = scalar_select %p48_p0, %s882_s14, %s50_s29  }
  0x1c   : > { %p1001_p7 = por %p144_p2, %p63_p10  ;;  %s178_s9 = sand.u32 1, %s882_s14  }
  0x1d   : > { %1103 = sst [smem:[#allocation19_spill]] %s999_s7  ;;  %s605_s10 = sshll.u32 %s178_s9, 3 }
  0x1e   : > { %s606_s11 = sshll.u32 %s890_s16, 3  ;;  %s182_s23 = scalar_lea.vmem [#allocation6], %s605_s10 }
  0x1f   : > { %s187_s21 = scalar_lea.hbm %s1089_s0, %s606_s11  ;;  %s191_s24 = sshll.u32 %s182_s23, 4  ;;  %s192_s24 = int_to_ptr.vmem [resolvable:$true] %s191_s24 }
  0x20   : > { %s189_s25 = sshll.u32 %s187_s21, 4  ;;  %p637_p8 = pnand %p648_p5, %p980_p11  ;;  %s190_s25 = int_to_ptr.hbm [resolvable:$true] %s189_s25 }
  0x21   : > { %s207_s29 = scalar_lea.hbm %s1090_s1, %s606_s11  ;;  %s198_s5 = sand.u32 1, %s894_s17  }
  0x22   : > { %s179_s2 = scalar_lea.sflag [#allocation7], %s178_s9  ;;  %s209_s28 = sshll.u32 %s207_s29, 4  ;;  %s210_s28 = int_to_ptr.hbm [resolvable:$true] %s209_s28 }
  0x23   : > { %639 = dma.hbm_to_vmem [thread:$0]  (!%p637_p8), %s190_s25, 128, %s192_s24, %s179_s2  }
  0x24   : > { %s202_s16 = scalar_lea.vmem [#allocation9], %s605_s10  ;;  %s199_s19 = scalar_lea.sflag [#allocation10], %s198_s5 }
  0x25   : > { %s211_s7 = sshll.u32 %s202_s16, 4  ;;  %220 = sbr.rel (%p961_p3) target bundleno = 804 (0x324), region = 32  ;;  %s212_s7 = int_to_ptr.vmem [resolvable:$true] %s211_s7 }
  0x26   : > { %642 = dma.hbm_to_vmem [thread:$0]  (!%p637_p8), %s210_s28, 128, %s212_s7, %s199_s19  }
  0x27   : > { %s1019_s30 = sand.u32 (!%p961_p3), 1, %s878_s13  }
  0x28   : > { %s1022_s11 = sshll.u32 (!%p961_p3), %s1019_s30, 3  ;;  %s223_s2 = scalar_lea.sflag (!%p961_p3), [#allocation7], %s1019_s30 }
  0x29   : > { %s226_s9 = scalar_lea.vmem (!%p961_p3), [#allocation6], %s1022_s11 }
  0x2a   : > { %857 = dma.done.wait (%p986_p12), %s223_s2, 128  }
  0x2b   : > { %859 = vsyncadd (%p986_p12), %s223_s2, 4294967168  ;;  %s232_s16 = sand.u32 1, %s953_s18   ;;  %s236_s28 = scalar_lea.vmem [#allocation9], %s1022_s11 }
  0x2c   : > { %s233_s22 = scalar_lea.sflag [#allocation10], %s232_s16 }
  0x2d   : > { %861 = dma.done.wait (%p986_p12), %s233_s22, 128  }
  0x2e   : > { %863 = vsyncadd (%p986_p12), %s233_s22, 4294967168 }
  0x2f   : > { %865 = dma.done.wait (%p64_p1), [#allocation10], 1536  }
  0x30   : > { %867 = vsyncadd (%p64_p1), [#allocation10], 4294965760  ;;  %v315_v0 = vld [vmem:[#allocation11 + $0x50] sm:$0xff]  ;;  %v313_v1 = vld [vmem:[#allocation11 + $0x38] sm:$0xff]  ;;  %vm279_vm0 = vcmask 261120   ;;  %vm304_vm1 = vcmask 7168  }
  0x31   : > { %v278_v2 = vld [vmem:[#allocation11 + $0x48] sm:$0xff]  ;;  %333 = vmatpush.msra.mxu1 %v315_v0  ;;  %v277_v3 = vld [vmem:[#allocation11 + $0x30] sm:$0xff]  ;;  %v311_v4 = vld [vmem:[#allocation11 + $0x20] sm:$0xff]  ;;  %v899_v14 = vmov -1e+30   ;;  %vm384_vm2 = vcmask 64512  }
  0x32   : > { %295 = vmatpush.msra.mxu0 %v278_v2  ;;  %v276_v5 = vld [vmem:[#allocation11 + $0x18] sm:$0xff]  ;;  %v309_v6 = vld [vmem:[#allocation11 + $0x8] sm:$0xff]  ;;  %v275_v7 = vld [vmem:[#allocation11] sm:$0xff]  ;;  %305 = vst.msk [vmem:[#allocation3] sm:$0xff] %vm304_vm1, %v899_v14  ;;  %v900_v20 = vmov 0   ;;  %v901_v21 = vmov 0.0  }
  0x33   : > { %334 = vmatpush.msra.mxu1 %v313_v1  ;;  %v308_v8 = vld [vmem:[%s236_s28] sm:$0xff]  ;;  %v274_v9 = vld [vmem:[%s226_s9] sm:$0xff]  ;;  %705 = vset.pattern.permute.xlu0 %v900_v20  ;;  %306 = vst.msk [vmem:[#allocation4] sm:$0xff] %vm304_vm1, %v901_v21  ;;  %s619_s18 = sshll.u32 %s886_s15, 3  ;;  %s269_s20 = scalar_lea.vmem [#allocation12], %s1022_s11 }
  0x34   : > { %296 = vmatpush.msra.mxu0 %v277_v3  ;;  %v316_v12 = vld [vmem:[#allocation11 + $0x58] sm:$0xff]  ;;  %v314_v13 = vld [vmem:[#allocation11 + $0x40] sm:$0xff]  ;;  %v312_v15 = vld [vmem:[#allocation11 + $0x28] sm:$0xff]  ;;  %706 = vset.pattern.permute.xlu1 %v900_v20  ;;  %s479_s10 = scalar_lea.hbm %s1092_s3, %s619_s18  ;;  %s481_s21 = sshll.u32 %s269_s20, 4  ;;  %s482_s21 = int_to_ptr.vmem [resolvable:$true] %s481_s21 }
  0x35   : > { %335 = vmatpush.msra.mxu1 %v311_v4  ;;  %353 = vmatpush.msra.mxu2 %v316_v12  ;;  %v310_v16 = vld [vmem:[#allocation11 + $0x10] sm:$0xff]  ;;  %s483_s23 = sshll.u32 %s479_s10, 4  ;;  %s468_s24 = scalar_lea.sflag [#allocation8], %s1019_s30  ;;  %s484_s23 = int_to_ptr.hbm [resolvable:$true] %s483_s23 }
  0x36   : > { %297 = vmatpush.msra.mxu0 %v276_v5  ;;  %707 = vset.pattern.permute.xlu2 %v900_v20  ;;  %s818_s25 = sshra.s32 %s484_s23, 4  ;;  %s824_s29 = scalar_lea.hbm %s1092_s3, 16  ;;  %s819_s25 = int_to_ptr.hbm [resolvable:$true] %s818_s25 }
  0x37   : > { %336 = vmatpush.msra.mxu1 %v309_v6  ;;  %354 = vmatpush.msra.mxu2 %v314_v13  ;;  %s820_s15 = scalar_lea.hbm %s819_s25, 8  ;;  %p825_p10 = scmp.lt.s32.totalorder %s819_s25, %s1092_s3 }
  0x38   : > { %298 = vmatpush.msra.mxu0 %v275_v7  ;;  %615 = vmatmul.msk.f32.vlgmr.msra.gmra.mxu1 %vm279_vm0, %v308_v8  ;;  %p821_p1 = scmp.ne.s32.totalorder %s819_s25, %s820_s15  ;;  %p826_p11 = scmp.lt.s32.totalorder %s824_s29, %s820_s15 }
  0x39   : > { %614 = vmatmul.msk.f32.vlgmr.msra.gmra.mxu0 %vm279_vm0, %v274_v9  ;;  %355 = vmatpush.msra.mxu2 %v312_v15  ;;  %v383_v22 = vld [vmem:[#allocation3] sm:$0xff] }
  0x3a   : > { %v400_v34 = vld [vmem:[#allocation4] sm:$0xff]  ;;  %p822_p3 = pnand %p821_p1, %p993_p4  ;;  %p827_p12 = por %p826_p11, %p825_p10 }
  0x3b   : > { %356 = vmatpush.msra.mxu2 %v310_v16 }
  0x3c   : > { %616 = vmatmul.msk.f32.vlgmr.msra.gmra.mxu2 %vm279_vm0, %v308_v8  ;;  %p823_p9 = pneg %p822_p3 }
  0x3e   : > { %p828_p13 = pnand %p827_p12, %p823_p9 }
  0xb5   : > { %v338_v10 = vpop.f32.mrf.mxu1 }
  0xb6   : > { %377 = vmatpush.xpose.msra.mxu3 %v338_v10  ;;  %v300_v11 = vpop.f32.mrf.mxu0 }
  0xb9   : > { %378 = vmatmul.f32.vlgmr.msra.gmra.mxu3 %v300_v11 }
  0xbf   : > { %v358_v26 = vpop.f32.mrf.mxu2 }
  0xc0   : > { %433 = vmatpush.msrb.mxu3 %v358_v26 }
 0x13c   : > { %v379_v17 = vpop.f32.mrf.mxu3 }
 0x13d   : > { %v382_v18 = vmul.f32 0.17677669, %v379_v17 }
 0x13f   : > { %v385_v19 = vsel %vm384_vm2, %v382_v18, -inf }
 0x140   : > { %386 = vmax.xlane.f32.xlu0 %v385_v19 }
 0x1b3   : > { %v387_v23 = vpop.xlane.xlu0 %386 }
 0x1b4   : > { %v388_v24 = vmax.f32 %v383_v22, %v387_v23 }
 0x1b6   : > { %v389_v25 = vsub.f32 %v383_v22, %v388_v24  ;;  %440 = vst.msk [vmem:[#allocation3] sm:$0xff] %vm304_vm1, %v388_v24  ;;  %394 = vperm.xlu0 %705, %v388_v24  }
 0x1b8   : > { %v390_v32 = vmul.f32 1.442695, %v389_v25 }
 0x228   : > { %v395_v27 = vpop.permute.xlu0 %394 }
 0x229   : > { %v397_v28 = vsub.f32 %v382_v18, %v395_v27 }
 0x22b   : > { %v398_v29 = vmul.f32 1.442695, %v397_v28 }
 0x22d   : > { %708 = vpow2.f32 %v398_v29 }
 0x22e   : > { %710 = vpow2.f32 %v390_v32 }
 0x233   : > { %v709_v30 = vpop.eup %708 }
 0x234   : > { %617 = vmatmul.msk.f32.vlgmr.msrb.gmra.mxu3 %vm384_vm2, %v709_v30  ;;  %v402_v31 = vsel %vm384_vm2, %v709_v30, 0.0  ;;  %v711_v33 = vpop.eup %710 }
 0x235   : > { %403 = vadd.xlane.f32.xlu1 %v402_v31  ;;  %v401_v35 = vmul.f32 %v711_v33, %v400_v34 }
 0x24e   : > { %411 = vperm.xlu1 %706, %v711_v33  }
 0x2a8   : > { %v404_v36 = vpop.xlane.xlu1 %403 }
 0x2a9   : > { %v405_v37 = vadd.f32 %v404_v36, %v401_v35 }
 0x2ab   : > { %407 = vst.msk [vmem:[#allocation4] sm:$0xff] %vm304_vm1, %v405_v37 }
 0x2b2   : > { %v445_v38 = vld [vmem:[#allocation4] sm:$0xff] }
 0x2b3   : > { %712 = vrcp.f32 %v445_v38  ;;  %v457_v42 = vand.u32 2147483648, %v445_v38  ;;  %v455_v44 = vand.u32 2147483647, %v445_v38  ;;  %vm451_vm4 = vweird.f32 %v445_v38 }
 0x2b5   : > { %v458_v46 = vor.u32 1.1754944e-38, %v457_v42  ;;  %vm456_vm6 = vcmp.eq.f32.partialorder %v455_v44, 8.507059e+37 }
 0x2b7   : > { %v435_v51 = vpop.f32.mrf.mxu3 }
 0x2b9   : > { %v713_v39 = vpop.eup %712 }
 0x2ba   : > { %v447_v40 = vmul.f32 %v713_v39, %v445_v38  ;;  %vm452_vm3 = vweird.f32 %v713_v39 }
 0x2bb   : > { %vm453_vm5 = vmor %vm451_vm4, %vm452_vm3 }
 0x2bc   : > { %v448_v41 = vsub.f32 1.0, %v447_v40 }
 0x2be   : > { %v449_v43 = vmul.f32 %v713_v39, %v448_v41 }
 0x2c0   : > { %v450_v45 = vadd.f32 %v713_v39, %v449_v43  ;;  %v412_v49 = vpop.permute.xlu1 %411 }
 0x2c1   : > { %v414_v50 = vmul.f32 0.0, %v412_v49 }
 0x2c2   : > { %v454_v47 = vsel %vm453_vm5, %v713_v39, %v450_v45 }
 0x2c3   : > { %v459_v48 = vsel %vm456_vm6, %v458_v46, %v454_v47  ;;  %v438_v52 = vadd.f32 %v435_v51, %v414_v50 }
 0x2c4   : > { %462 = vperm.xlu2 %707, %v459_v48  }
 0x31e   : > { %v463_v53 = vpop.permute.xlu2 %462 }
 0x31f   : > { %v465_v54 = vmul.f32 %v463_v53, %v438_v52 }
 0x321   : > { %466 = vst [vmem:[%s269_s20] sm:$0xff] %v465_v54 }
 0x322   : > { %831 = shalt.err (!%p828_p13)
}
 0x323   : > { %630 = dma.vmem_to_hbm [thread:$0]  (%p993_p4), %s482_s21, 128, %s484_s23, %s468_s24  }
 0x324 PF: > { %s495_s30 = sand.u32 1, %s874_s12   ;;  %p644_p0 = pnand %p604_p6, %p1001_p7 }
 0x325   : > { %s496_s11 = scalar_lea.sflag [#allocation8], %s495_s30 }
 0x326   : > { %p645_p2 = pneg %p644_p0 }
 0x328   : > { %869 = dma.done.wait (%p645_p2), %s496_s11, 128  }
 0x329   : > { %871 = vsyncadd (%p645_p2), %s496_s11, 4294967168  ;;  %s22_s17 = sadd.s32 1, %s894_s17   ;;  %s1105_s2 = sld [smem:[#allocation19_spill]] }
 0x32a   : > { %p19_p5 = scmp.ge.s32.totalorder %s22_s17, 4   ;;  %s1106_s15 = sld [smem:[#allocation17_spill]] }
 0x32b   : > { %s1107_s16 = sld [smem:[#allocation18_spill]]  ;;  %s1108_s12 = smov %s878_s13 }
 0x32c   : > { %s1109_s13 = smov %s882_s14  ;;  %21 = sbr.rel (!%p19_p5) target bundleno = 10 (0xa), region = 102 }
 0x32f   : > { %s1110_s14 = smov %s1105_s2 }
 0x331   :  { %502 = vsyncpa [#allocation7], 1 }
 0x332   :  { %504 = vsyncpa [#allocation7 + $0x1], 1 }
 0x333   :  { %505 = vsyncpa [#allocation10], 1 }
 0x334   :  { %507 = vsyncpa [#allocation10 + $0x1], 1 }
 0x335   :  { %508 = vsyncpa [#allocation8], 1 }
 0x336   :  { %510 = vsyncpa [#allocation8 + $0x1], 1 }

</bundles_post_ra>
